<compile_context>
chip_gen: v5e
topology: v5e:2x2
jax: 0.10.0
libtpu: 0.0.40
codegen_flags: <defaults>
</compile_context>

<pallas_src>
import functools

import jax
import jax.numpy as jnp
from jax.experimental import pallas as pl
from jax.experimental.pallas import tpu as pltpu


def _prop_kernel(b_ref, x_ref, o_ref):
    # b_ref: (P*V, V)   stacked propagation matrices [I; A0^T; (A0^T)^2; A1^T; ...]
    #                    (constant index_map -> fetched once, resident in VMEM)
    # x_ref: (V, TM)     lane-dense slab of x (V on sublanes, N*C*L tile on lanes)
    # o_ref: (P*V, TM)   all P output blocks for this M tile, one fused MXU matmul
    o_ref[...] = jnp.dot(
        b_ref[...], x_ref[...], preferred_element_type=jnp.float32
    ).astype(o_ref.dtype)


def _round_up(a, b):
    return ((a + b - 1) // b) * b


def _choose_tile(m128, v, pv, itemsize, vmem_budget_bytes=12 * 1024 * 1024):
    """Byte-based tile selection.

    Largest 128-multiple TM such that 2*(x block + out block) + B fits the
    budget.  12 MiB fits every generation's default scoped VMEM (16 MiB v5e,
    32 MiB v6e/v7x) with headroom, and v7x's 64 MiB physical per-TC VMEM.
    """
    resident_b = 2 * itemsize * pv * v          # B stack (conservatively x2)
    denom = 2 * itemsize * (v + pv)             # double-buffered x + out per lane
    tm_max = max(128, (vmem_budget_bytes - resident_b) // denom)
    tm = (tm_max // 128) * 128
    tm = max(128, min(tm, 2048, m128))          # 2048 already amortizes step cost
    return tm


def gcn_forward(x, support, order=2):
    """Pallas-backed gcn.forward: concat([x, A^T x, ..., (A^T)^order x per support], axis=1)."""
    N, C, V, L = x.shape
    S = len(support)
    P = 1 + S * order          # identity block (== x) + all propagations
    PV = P * V
    M = N * C * L
    itemsize = jnp.dtype(x.dtype).itemsize

    # ---- host-side precompute (tiny V x V work): identity + powers of A^T per support,
    #      fused into the ROW dimension of a single (P*V, V) matrix.
    mats = [jnp.eye(V, dtype=jnp.float32)]
    for a in support:
        at = jnp.asarray(a, jnp.float32).T
        cur = at
        mats.append(cur)
        for _ in range(order - 1):
            cur = jnp.dot(cur, at, precision=jax.lax.Precision.HIGHEST)
            mats.append(cur)
    b_stack = jnp.stack(mats, axis=0).reshape(PV, V).astype(x.dtype)   # (P*V, V)

    # ---- lane-dense view of x: (V, M), M padded up to a multiple of the chosen tile.
    x_flat = jnp.transpose(x, (2, 0, 1, 3)).reshape(V, M)

    m128 = _round_up(M, 128)
    tm = _choose_tile(m128, V, PV, itemsize)
    m_pad = _round_up(M, tm)
    n_mtiles = m_pad // tm
    # v7x megacore: avoid a degenerate single-step grid when there is enough work
    # to split across both TensorCores.
    if n_mtiles == 1 and tm >= 256:
        tm = _round_up(tm // 2, 128)
        m_pad = _round_up(M, tm)
        n_mtiles = m_pad // tm
    if m_pad != M:
        x_flat = jnp.pad(x_flat, ((0, 0), (0, m_pad - M)))

    cost = pl.CostEstimate(
        flops=2 * PV * V * m_pad,
        transcendentals=0,
        bytes_accessed=itemsize * (V * m_pad + PV * V + PV * m_pad),
    )

    out = pl.pallas_call(
        _prop_kernel,
        out_shape=jax.ShapeDtypeStruct((PV, m_pad), x.dtype),
        grid=(n_mtiles,),
        in_specs=[
            pl.BlockSpec((PV, V), lambda j: (0, 0)),   # B: fetched once, resident
            pl.BlockSpec((V, tm), lambda j: (0, j)),   # x slab tile
        ],
        out_specs=pl.BlockSpec((PV, tm), lambda j: (0, j)),
        compiler_params=pltpu.CompilerParams(dimension_semantics=("parallel",)),
        cost_estimate=cost,
    )(b_stack, x_flat)

    # ---- back to NCVL: row block p occupies channels [p*C, (p+1)*C); block 0 is x
    # itself, so the torch.cat over channels is just this reshape/transpose.
    out = out[:, :M].reshape(P, V, N, C, L)
    h = jnp.transpose(out, (2, 0, 3, 1, 4)).reshape(N, P * C, V, L)
    return h


def gcn_reference(x, support, order=2):
    """Pure-JAX reference mirroring the PyTorch forward exactly."""
    out = [x]
    for a in support:
        x1 = jnp.einsum('ncvl,vw->ncwl', x, a)
        out.append(x1)
        for _ in range(2, order + 1):
            x2 = jnp.einsum('ncvl,vw->ncwl', x1, a)
            out.append(x2)
            x1 = x2
    return jnp.concatenate(out, axis=1)


if __name__ == "__main__":
    key = jax.random.PRNGKey(0)
    N, C, V, L = 2, 4, 16, 16          # batch, channels (c_in), nodes, seq len
    support_len, order = 3, 2          # gcn defaults

    kx, *ksup = jax.random.split(key, 1 + support_len)
    x = jax.random.normal(kx, (N, C, V, L), dtype=jnp.float32)

    # Deterministic row-normalized adjacency-like supports.
    support = [jax.nn.softmax(jax.random.normal(k, (V, V), dtype=jnp.float32), axis=-1)
               for k in ksup]

    gcn_fn = jax.jit(functools.partial(gcn_forward, order=order))
    h = jax.block_until_ready(gcn_fn(x, support))

    h_ref = gcn_reference(x, support, order=order)
    assert h.shape == (N, C * (1 + support_len * order), V, L), h.shape
    max_err = float(jnp.max(jnp.abs(h - h_ref)))
    assert jnp.allclose(h, h_ref, atol=2e-5, rtol=2e-5), f"mismatch vs reference: {max_err}"

    print("KERNEL_OK")
</pallas_src>

<mosaic_0001>
module attributes {stable_mosaic.version = 11 : i64} {
  func.func @_prop_kernel(%arg0: i32, %arg1: memref<112x16xf32, #tpu.memory_space<vmem>>, %arg2: memref<16x128xf32, #tpu.memory_space<vmem>>, %arg3: memref<112x128xf32, #tpu.memory_space<vmem>>) attributes {dimension_semantics = [#tpu.dimension_semantics<parallel>], iteration_bounds = array<i64: 1>, scalar_prefetch = 0 : i64, scratch_operands = 0 : i64, tpu.core_type = #tpu.core_type<tc>, window_params = [{pipeline_mode = #tpu.pipeline_mode<synchronous>, transform_indices = @transform_0, window_bounds = array<i64: 112, 16>}, {transform_indices = @transform_1, window_bounds = array<i64: 16, 128>}, {transform_indices = @transform_2, window_bounds = array<i64: 112, 128>}]} {
    %c0 = arith.constant 0 : index
    %c0_0 = arith.constant 0 : index
    %0 = vector.load %arg1[%c0, %c0_0] : memref<112x16xf32, #tpu.memory_space<vmem>>, vector<112x16xf32>
    %c0_1 = arith.constant 0 : index
    %c0_2 = arith.constant 0 : index
    %1 = vector.load %arg2[%c0_1, %c0_2] : memref<16x128xf32, #tpu.memory_space<vmem>>, vector<16x128xf32>
    %cst = arith.constant dense<0.000000e+00> : vector<112x128xf32>
    %2 = tpu.matmul %0, %1, %cst {dimension_numbers = #tpu.dot_dimension_numbers<[1], [0], [0], [1], [0, 0, 1, 1], [], []>} : vector<112x16xf32>, vector<16x128xf32>, vector<112x128xf32> -> vector<112x128xf32>
    %c0_3 = arith.constant 0 : index
    %c0_4 = arith.constant 0 : index
    %3 = vector.load %arg3[%c0_3, %c0_4] : memref<112x128xf32, #tpu.memory_space<vmem>>, vector<112x128xf32>
    tpu.vector_store %arg3[%c0_3, %c0_4], %2 {strides = array<i32>} : memref<112x128xf32, #tpu.memory_space<vmem>>, vector<112x128xf32>,
    return
  }
  func.func @transform_0(%arg0: i32) -> (i32, i32) {
    %c0_i32 = arith.constant 0 : i32
    %c0_i32_0 = arith.constant 0 : i32
    %c0_i32_1 = arith.constant 0 : i32
    return %c0_i32, %c0_i32_0 : i32, i32
  }
  func.func @transform_1(%arg0: i32) -> (i32, i32) {
    %c0_i32 = arith.constant 0 : i32
    %c0_i32_0 = arith.constant 0 : i32
    return %c0_i32, %arg0 : i32, i32
  }
  func.func @transform_2(%arg0: i32) -> (i32, i32) {
    %c0_i32 = arith.constant 0 : i32
    %c0_i32_0 = arith.constant 0 : i32
    return %c0_i32, %arg0 : i32, i32
  }
}

</mosaic_0001>

<bundles_post_ra>
// kernel: gcn_forward.1
= control target key start
LH: loop header
LB: loop body
LE: loop exit
PB: predicated region body
PF: predicated region fallthrough
CT: control target
= control target key end

     0   :  { %vm27_vm0 = vcmask 130048   ;;  %s286_s1 = inlined_call_operand.vmem [shape: f32[16,128], index: 1, kind: input, shape index: {}]   ;;  %s287_s0 = inlined_call_operand.vmem [shape: f32[112,16], index: 0, kind: input, shape index: {}]   ;;  %s288_s2 = inlined_call_operand.vmem [shape: f32[112,128], index: 2, kind: output, shape index: {}]  }
   0x1   :  { %v26_v0 = vld [vmem:[%s286_s1 + $0x8] sm:$0xff]  ;;  %v25_v1 = vld [vmem:[%s286_s1] sm:$0xff]  ;;  %v21_v10 = vld [vmem:[%s287_s0 + $0x50] sm:$0xff] }
   0x2   :  { %162 = vmatpush.msra.mxu2 %v26_v0  ;;  %v19_v2 = vld [vmem:[%s287_s0 + $0x40] sm:$0xff]  ;;  %84 = vmatpush.msra.mxu0 %v26_v0  ;;  %v20_v6 = vld [vmem:[%s287_s0 + $0x48] sm:$0xff]  ;;  %v13_v11 = vld [vmem:[%s287_s0 + $0x10] sm:$0xff] }
   0x3   :  { %161 = vmatpush.msra.mxu1 %v26_v0  ;;  %v11_v3 = vld [vmem:[%s287_s0] sm:$0xff]  ;;  %163 = vmatpush.msra.mxu3 %v26_v0  ;;  %v12_v7 = vld [vmem:[%s287_s0 + $0x8] sm:$0xff]  ;;  %v17_v12 = vld [vmem:[%s287_s0 + $0x30] sm:$0xff] }
   0x4   :  { %v15_v4 = vld [vmem:[%s287_s0 + $0x20] sm:$0xff]  ;;  %165 = vmatpush.msra.mxu2 %v25_v1  ;;  %85 = vmatpush.msra.mxu0 %v25_v1  ;;  %v16_v8 = vld [vmem:[%s287_s0 + $0x28] sm:$0xff]  ;;  %v22_v13 = vld [vmem:[%s287_s0 + $0x58] sm:$0xff] }
   0x5   :  { %155 = vmatmul.msk.f32.vlgmr.msra.gmra.mxu2 %vm27_vm0, %v19_v2  ;;  %164 = vmatpush.msra.mxu1 %v25_v1  ;;  %v23_v5 = vld [vmem:[%s287_s0 + $0x60] sm:$0xff]  ;;  %v24_v9 = vld [vmem:[%s287_s0 + $0x68] sm:$0xff]  ;;  %v14_v14 = vld [vmem:[%s287_s0 + $0x18] sm:$0xff] }
   0x6   :  { %147 = vmatmul.msk.f32.vlgmr.msra.gmra.mxu0 %vm27_vm0, %v11_v3  ;;  %151 = vmatmul.msk.f32.vlgmr.msra.gmra.mxu1 %vm27_vm0, %v15_v4  ;;  %v18_v15 = vld [vmem:[%s287_s0 + $0x38] sm:$0xff] }
   0x7   :  { %166 = vmatpush.msra.mxu3 %v25_v1 }
   0x8   :  { %159 = vmatmul.msk.f32.vlgmr.msra.gmra.mxu3 %vm27_vm0, %v23_v5 }
   0xd   :  { %156 = vmatmul.msk.f32.gmra.mxu2 %vm27_vm0, %v20_v6 }
   0xe   :  { %148 = vmatmul.msk.f32.gmra.mxu0 %vm27_vm0, %v12_v7  ;;  %152 = vmatmul.msk.f32.gmra.mxu1 %vm27_vm0, %v16_v8 }
  0x10   :  { %160 = vmatmul.msk.f32.gmra.mxu3 %vm27_vm0, %v24_v9 }
  0x15   :  { %157 = vmatmul.msk.f32.gmra.mxu2 %vm27_vm0, %v21_v10 }
  0x16   :  { %149 = vmatmul.msk.f32.gmra.mxu0 %vm27_vm0, %v13_v11  ;;  %153 = vmatmul.msk.f32.gmra.mxu1 %vm27_vm0, %v17_v12 }
  0x1d   :  { %158 = vmatmul.msk.f32.gmra.mxu2 %vm27_vm0, %v22_v13 }
  0x1e   :  { %150 = vmatmul.msk.f32.gmra.mxu0 %vm27_vm0, %v14_v14  ;;  %154 = vmatmul.msk.f32.gmra.mxu1 %vm27_vm0, %v18_v15 }
  0x83   :  { %v87_v16 = vpop.f32.mrf.mxu0  ;;  %v99_v17 = vpop.f32.mrf.mxu1 }
  0x84   :  { %129 = vst [vmem:[%s288_s2] sm:$0xff] %v87_v16 }
  0x85   :  { %133 = vst [vmem:[%s288_s2 + $0x20] sm:$0xff] %v99_v17 }
  0x88   :  { %v111_v18 = vpop.f32.mrf.mxu2 }
  0x89   :  { %137 = vst [vmem:[%s288_s2 + $0x40] sm:$0xff] %v111_v18 }
  0x8b   :  { %v90_v19 = vpop.f32.mrf.mxu0  ;;  %v102_v20 = vpop.f32.mrf.mxu1 }
  0x8c   :  { %130 = vst [vmem:[%s288_s2 + $0x8] sm:$0xff] %v90_v19  ;;  %v123_v21 = vpop.f32.mrf.mxu3 }
  0x8d   :  { %134 = vst [vmem:[%s288_s2 + $0x28] sm:$0xff] %v102_v20 }
  0x8e   :  { %141 = vst [vmem:[%s288_s2 + $0x60] sm:$0xff] %v123_v21 }
  0x90   :  { %v114_v22 = vpop.f32.mrf.mxu2 }
  0x91   :  { %138 = vst [vmem:[%s288_s2 + $0x48] sm:$0xff] %v114_v22 }
  0x93   :  { %v93_v23 = vpop.f32.mrf.mxu0  ;;  %v105_v24 = vpop.f32.mrf.mxu1 }
  0x94   :  { %131 = vst [vmem:[%s288_s2 + $0x10] sm:$0xff] %v93_v23  ;;  %v126_v25 = vpop.f32.mrf.mxu3 }
  0x95   :  { %135 = vst [vmem:[%s288_s2 + $0x30] sm:$0xff] %v105_v24 }
  0x96   :  { %142 = vst [vmem:[%s288_s2 + $0x68] sm:$0xff] %v126_v25 }
  0x98   :  { %v117_v26 = vpop.f32.mrf.mxu2 }
  0x99   :  { %139 = vst [vmem:[%s288_s2 + $0x50] sm:$0xff] %v117_v26 }
  0x9b   :  { %v96_v27 = vpop.f32.mrf.mxu0  ;;  %v108_v28 = vpop.f32.mrf.mxu1 }
  0x9c   :  { %132 = vst [vmem:[%s288_s2 + $0x18] sm:$0xff] %v96_v27 }
  0x9d   :  { %136 = vst [vmem:[%s288_s2 + $0x38] sm:$0xff] %v108_v28 }
  0xa0   :  { %v120_v29 = vpop.f32.mrf.mxu2 }
  0xa1   :  { %140 = vst [vmem:[%s288_s2 + $0x58] sm:$0xff] %v120_v29 }

</bundles_post_ra>
